<compile_context>
chip_gen: v5e
topology: v5e:2x2
jax: 0.10.0
libtpu: 0.0.40
codegen_flags: <defaults>
</compile_context>

<pallas_src>
import functools

import jax
import jax.numpy as jnp
from jax.experimental import pallas as pl
from jax.experimental.pallas import tpu as pltpu

LANE = 128      # lane width: pad the ragged class dim (10 -> 128)
TILE_B = 512    # default (max) batch tile fed to the MXU per grid step


def _round_up(x, m):
    return ((x + m - 1) // m) * m


def _cdiv(a, b):
    return -(-a // b)


def _pick_tile_b(batch, tile_b_max):
    """Batch tile: big to amortize per-step overhead, but shrink for small
    batches and keep >= 2 grid steps when the batch is large enough so both
    TensorCores are used on dual-TC parts (v7x)."""
    if batch >= 2 * tile_b_max:
        return tile_b_max
    half = _round_up(_cdiv(batch, 2), 8)
    if half >= 128:
        return min(half, tile_b_max)
    return min(_round_up(batch, 8), tile_b_max)


# ----------------------------------------------------------------------------
# Fused Pallas kernel: the whole FNN forward for one batch tile.
# ----------------------------------------------------------------------------
def _fnn_fused_kernel(x_ref, w_in_ref, b_in_ref, w_h_ref, b_h_ref,
                      w_emb_ref, b_emb_ref, w_cls_ref, b_cls_ref,
                      logits_ref, acts_ref, *, n_hidden: int):
    cdt = w_in_ref.dtype  # MXU operand dtype (bf16 in production, f32 for checks)

    # fc_in + relu : (TILE_B, 784) @ (784, W) with f32 accumulation
    h = jnp.dot(x_ref[...], w_in_ref[...], preferred_element_type=jnp.float32)
    h = jnp.maximum(h + b_in_ref[...], 0.0).astype(cdt)

    # hidden fcs + relu; record each f32 post-ReLU activation (the module's `a`)
    for l in range(n_hidden):
        hf = jnp.dot(h, w_h_ref[l], preferred_element_type=jnp.float32)
        hf = jnp.maximum(hf + b_h_ref[l], 0.0)
        acts_ref[l] = hf.astype(acts_ref.dtype)   # f32 out, pre-quantization
        h = hf.astype(cdt)

    # fc_embeddings + relu
    h = jnp.dot(h, w_emb_ref[...], preferred_element_type=jnp.float32)
    h = jnp.maximum(h + b_emb_ref[...], 0.0).astype(cdt)

    # fc_classifier (no relu); output lanes zero-padded out to 128
    y = jnp.dot(h, w_cls_ref[...], preferred_element_type=jnp.float32)
    logits_ref[...] = (y + b_cls_ref[...]).astype(logits_ref.dtype)


# ----------------------------------------------------------------------------
# Wrapper: choose batch tile, (rarely) pad batch, call the fused kernel.
# ----------------------------------------------------------------------------
@functools.partial(jax.jit, static_argnames=("num_classes", "tile_b"))
def fnn_forward(params, x, *, num_classes, tile_b=TILE_B):
    w_in, b_in = params["w_in"], params["b_in"]
    w_h, b_h = params["w_h"], params["b_h"]
    w_emb, b_emb = params["w_emb"], params["b_emb"]
    w_cls, b_cls = params["w_cls"], params["b_cls"]

    in_features, width = w_in.shape          # (784, W) -- no feature padding
    n_hidden = w_h.shape[0]
    out_pad = w_cls.shape[1]                 # num_classes padded to 128 lanes
    cdt = w_in.dtype

    B = x.shape[0]
    xf = x.reshape(B, -1).astype(cdt)        # torch.flatten(x, 1)
    assert xf.shape[1] == in_features, "input features must match fc_in"

    tb = _pick_tile_b(B, tile_b)
    b_pad = _round_up(B, tb)
    if b_pad != B:                            # usually a no-op (no HBM copy)
        xf = jnp.pad(xf, ((0, b_pad - B), (0, 0)))
    grid = (b_pad // tb,)

    kernel = functools.partial(_fnn_fused_kernel, n_hidden=n_hidden)

    # Advisory cost estimate so XLA can schedule surrounding ops sensibly.
    weight_bytes = sum(int(p.size) * p.dtype.itemsize
                       for p in (w_in, b_in, w_h, b_h, w_emb, b_emb, w_cls, b_cls))
    flops = 2 * b_pad * (in_features * width
                         + (n_hidden + 1) * width * width
                         + width * out_pad)
    bytes_accessed = (int(xf.size) * xf.dtype.itemsize
                      + weight_bytes
                      + n_hidden * b_pad * width * 4                 # f32 acts
                      + b_pad * out_pad * jnp.dtype(cdt).itemsize)   # logits

    logits_pad, acts_pad = pl.pallas_call(
        kernel,
        out_shape=(
            jax.ShapeDtypeStruct((b_pad, out_pad), cdt),               # logits
            jax.ShapeDtypeStruct((n_hidden, b_pad, width), jnp.float32),  # acts
        ),
        grid=grid,
        in_specs=[
            pl.BlockSpec((tb, in_features), lambda i: (i, 0)),             # x tile
            pl.BlockSpec((in_features, width), lambda i: (0, 0)),          # w_in
            pl.BlockSpec((1, width), lambda i: (0, 0)),                    # b_in
            pl.BlockSpec((n_hidden, width, width), lambda i: (0, 0, 0)),   # w_h
            pl.BlockSpec((n_hidden, 1, width), lambda i: (0, 0, 0)),       # b_h
            pl.BlockSpec((width, width), lambda i: (0, 0)),                # w_emb
            pl.BlockSpec((1, width), lambda i: (0, 0)),                    # b_emb
            pl.BlockSpec((width, out_pad), lambda i: (0, 0)),              # w_cls
            pl.BlockSpec((1, out_pad), lambda i: (0, 0)),                  # b_cls
        ],
        out_specs=(
            pl.BlockSpec((tb, out_pad), lambda i: (i, 0)),                 # logits
            pl.BlockSpec((n_hidden, tb, width), lambda i: (0, i, 0)),      # acts
        ),
        compiler_params=pltpu.CompilerParams(
            dimension_semantics=("parallel",),
            vmem_limit_bytes=32 * 1024 * 1024,
        ),
        cost_estimate=pl.CostEstimate(flops=flops, transcendentals=0,
                                      bytes_accessed=bytes_accessed),
    )(xf, w_in, b_in, w_h, b_h, w_emb, b_emb, w_cls, b_cls)

    logits = logits_pad[:B, :num_classes]
    acts = [acts_pad[l, :B, :] for l in range(n_hidden)]   # already f32
    return logits, acts


# ----------------------------------------------------------------------------
# Parameter init (deterministic, mimics PyTorch nn.Linear default init)
# ----------------------------------------------------------------------------
def _init_linear(key, fan_in, fan_out, dtype=jnp.float32):
    kw, kb = jax.random.split(key)
    bound = 1.0 / float(fan_in) ** 0.5
    # Stored as (in, out) so the kernel computes x @ W directly.
    w = jax.random.uniform(kw, (fan_in, fan_out), dtype, -bound, bound)
    b = jax.random.uniform(kb, (fan_out,), dtype, -bound, bound)
    return w, b


def init_fnn_params(key, width, depth, num_classes):
    """Raw f32 parameters (used by the pure-JAX reference)."""
    assert depth >= 3, "need at least one hidden fc (depth - 2 >= 1)"
    keys = jax.random.split(key, depth + 1)
    return {
        "fc_in": _init_linear(keys[0], 28 * 28, width),
        "fcs": [_init_linear(keys[1 + i], width, width) for i in range(depth - 2)],
        "fc_embeddings": _init_linear(keys[depth - 1], width, width),
        "fc_classifier": _init_linear(keys[depth], width, num_classes),
    }


def prepare_fnn_params(raw, *, compute_dtype=jnp.bfloat16):
    """Stack / pad / cast raw params into the layout the fused kernel expects."""
    w_in, b_in = raw["fc_in"]
    w_cls_raw, b_cls_raw = raw["fc_classifier"]
    num_classes = w_cls_raw.shape[1]
    out_pad = _round_up(num_classes, LANE)            # 10 -> 128 (zero columns)

    w_cls = jnp.pad(w_cls_raw, ((0, 0), (0, out_pad - num_classes))).astype(compute_dtype)
    b_cls = jnp.pad(b_cls_raw, (0, out_pad - num_classes))[None, :].astype(jnp.float32)

    return {
        "w_in": w_in.astype(compute_dtype),                             # (784, W) cdt
        "b_in": b_in[None, :].astype(jnp.float32),                      # (1, W)   f32
        "w_h": jnp.stack([w for (w, _) in raw["fcs"]]).astype(compute_dtype),       # (H, W, W)
        "b_h": jnp.stack([b for (_, b) in raw["fcs"]])[:, None, :].astype(jnp.float32),  # (H, 1, W)
        "w_emb": raw["fc_embeddings"][0].astype(compute_dtype),         # (W, W)   cdt
        "b_emb": raw["fc_embeddings"][1][None, :].astype(jnp.float32),  # (1, W)   f32
        "w_cls": w_cls,                                                 # (W, 128) cdt
        "b_cls": b_cls,                                                 # (1, 128) f32
    }


# ----------------------------------------------------------------------------
# Pure-JAX f32 reference (matches the PyTorch module's forward)
# ----------------------------------------------------------------------------
def ref_forward(raw, x):
    x = x.reshape(x.shape[0], -1)
    x = jax.nn.relu(x @ raw["fc_in"][0] + raw["fc_in"][1])
    a = []
    for (w, b) in raw["fcs"]:
        x = jax.nn.relu(x @ w + b)
        a.append(x)
    x = jax.nn.relu(x @ raw["fc_embeddings"][0] + raw["fc_embeddings"][1])
    x = x @ raw["fc_classifier"][0] + raw["fc_classifier"][1]
    return x, a


if __name__ == "__main__":
    # Configuration consistent with the module: width=128, depth=4 (=> 2 hidden
    # fcs), num_classes=10; MNIST-shaped NCHW inputs, small batch.
    width, depth, num_classes = 128, 4, 10
    batch = 8

    key = jax.random.PRNGKey(0)
    k_params, k_x = jax.random.split(key)

    raw = init_fnn_params(k_params, width, depth, num_classes)
    x = jax.random.normal(k_x, (batch, 1, 28, 28), jnp.float32)  # NCHW

    # Production path: bf16 weights/activations, f32 accumulation, f32 acts out.
    params_bf16 = prepare_fnn_params(raw, compute_dtype=jnp.bfloat16)
    logits, acts = fnn_forward(params_bf16, x, num_classes=num_classes)
    logits = jax.block_until_ready(logits)
    acts = [jax.block_until_ready(h) for h in acts]

    assert logits.shape == (batch, num_classes)
    assert len(acts) == depth - 2
    assert all(h.shape == (batch, width) for h in acts)
    assert all(h.dtype == jnp.float32 for h in acts)

    # Same fused kernel in f32 for a tight-tolerance correctness check.
    params_f32 = prepare_fnn_params(raw, compute_dtype=jnp.float32)
    logits32, acts32 = fnn_forward(params_f32, x, num_classes=num_classes)
    logits32 = jax.block_until_ready(logits32)

    ref_logits, ref_acts = ref_forward(raw, x)

    assert jnp.allclose(logits32, ref_logits, atol=1e-4, rtol=1e-4)
    for h, hr in zip(acts32, ref_acts):
        assert jnp.allclose(h, hr, atol=1e-4, rtol=1e-4)

    # bf16 path checked against the f32 reference with bf16-appropriate tolerance.
    assert jnp.allclose(logits.astype(jnp.float32), ref_logits, atol=1e-1, rtol=1e-1)
    for h, hr in zip(acts, ref_acts):
        assert jnp.allclose(h, hr, atol=1e-1, rtol=1e-1)

    print("KERNEL_OK")
</pallas_src>

<mosaic_0001>
module attributes {stable_mosaic.version = 11 : i64} {
  func.func @_fnn_fused_kernel(%arg0: i32, %arg1: memref<8x784xbf16, #tpu.memory_space<vmem>>, %arg2: memref<784x128xbf16, #tpu.memory_space<vmem>>, %arg3: memref<1x128xf32, #tpu.memory_space<vmem>>, %arg4: memref<2x128x128xbf16, #tpu.memory_space<vmem>>, %arg5: memref<2x1x128xf32, #tpu.memory_space<vmem>>, %arg6: memref<128x128xbf16, #tpu.memory_space<vmem>>, %arg7: memref<1x128xf32, #tpu.memory_space<vmem>>, %arg8: memref<128x128xbf16, #tpu.memory_space<vmem>>, %arg9: memref<1x128xf32, #tpu.memory_space<vmem>>, %arg10: memref<8x128xbf16, #tpu.memory_space<vmem>>, %arg11: memref<2x8x128xf32, #tpu.memory_space<vmem>>) attributes {dimension_semantics = [#tpu.dimension_semantics<parallel>], iteration_bounds = array<i64: 1>, scalar_prefetch = 0 : i64, scratch_operands = 0 : i64, tpu.core_type = #tpu.core_type<tc>, window_params = [{transform_indices = @transform_0, window_bounds = array<i64: 8, 784>}, {pipeline_mode = #tpu.pipeline_mode<synchronous>, transform_indices = @transform_1, window_bounds = array<i64: 784, 128>}, {pipeline_mode = #tpu.pipeline_mode<synchronous>, transform_indices = @transform_2, window_bounds = array<i64: 1, 128>}, {pipeline_mode = #tpu.pipeline_mode<synchronous>, transform_indices = @transform_3, window_bounds = array<i64: 2, 128, 128>}, {pipeline_mode = #tpu.pipeline_mode<synchronous>, transform_indices = @transform_4, window_bounds = array<i64: 2, 1, 128>}, {pipeline_mode = #tpu.pipeline_mode<synchronous>, transform_indices = @transform_5, window_bounds = array<i64: 128, 128>}, {pipeline_mode = #tpu.pipeline_mode<synchronous>, transform_indices = @transform_6, window_bounds = array<i64: 1, 128>}, {pipeline_mode = #tpu.pipeline_mode<synchronous>, transform_indices = @transform_7, window_bounds = array<i64: 128, 128>}, {pipeline_mode = #tpu.pipeline_mode<synchronous>, transform_indices = @transform_8, window_bounds = array<i64: 1, 128>}, {transform_indices = @transform_9, window_bounds = array<i64: 8, 128>}, {transform_indices = @transform_10, window_bounds = array<i64: 2, 8, 128>}]} {
    %c0 = arith.constant 0 : index
    %c0_0 = arith.constant 0 : index
    %0 = vector.load %arg1[%c0, %c0_0] : memref<8x784xbf16, #tpu.memory_space<vmem>>, vector<8x784xbf16>
    %c0_1 = arith.constant 0 : index
    %c0_2 = arith.constant 0 : index
    %1 = vector.load %arg2[%c0_1, %c0_2] : memref<784x128xbf16, #tpu.memory_space<vmem>>, vector<784x128xbf16>
    %cst = arith.constant dense<0.000000e+00> : vector<8x128xf32>
    %2 = tpu.matmul %0, %1, %cst {dimension_numbers = #tpu.dot_dimension_numbers<[1], [0], [0], [1], [0, 0, 1, 1], [], []>} : vector<8x784xbf16>, vector<784x128xbf16>, vector<8x128xf32> -> vector<8x128xf32>
    %c0_3 = arith.constant 0 : index
    %c0_4 = arith.constant 0 : index
    %3 = vector.load %arg3[%c0_3, %c0_4] : memref<1x128xf32, #tpu.memory_space<vmem>>, vector<1x128xf32>
    %4 = vector.broadcast %3 : vector<1x128xf32> to vector<8x128xf32>
    %5 = arith.addf %2, %4 : vector<8x128xf32>
    %cst_5 = arith.constant 0.000000e+00 : f32
    %6 = vector.broadcast %cst_5 : f32 to vector<8x128xf32>
    %7 = arith.maximumf %5, %6 : vector<8x128xf32>
    %8 = arith.truncf %7 : vector<8x128xf32> to vector<8x128xbf16>
    %c0_6 = arith.constant 0 : index
    %c0_7 = arith.constant 0 : index
    %c0_8 = arith.constant 0 : index
    %9 = vector.load %arg4[%c0_6, %c0_7, %c0_8] : memref<2x128x128xbf16, #tpu.memory_space<vmem>>, vector<1x128x128xbf16>
    %10 = vector.shape_cast %9 : vector<1x128x128xbf16> to vector<128x128xbf16>
    %cst_9 = arith.constant dense<0.000000e+00> : vector<8x128xf32>
    %11 = tpu.matmul %8, %10, %cst_9 {dimension_numbers = #tpu.dot_dimension_numbers<[1], [0], [0], [1], [0, 0, 1, 1], [], []>} : vector<8x128xbf16>, vector<128x128xbf16>, vector<8x128xf32> -> vector<8x128xf32>
    %c0_10 = arith.constant 0 : index
    %c0_11 = arith.constant 0 : index
    %c0_12 = arith.constant 0 : index
    %12 = vector.load %arg5[%c0_10, %c0_11, %c0_12] : memref<2x1x128xf32, #tpu.memory_space<vmem>>, vector<1x1x128xf32>
    %13 = vector.shape_cast %12 : vector<1x1x128xf32> to vector<1x128xf32>
    %14 = vector.broadcast %13 : vector<1x128xf32> to vector<8x128xf32>
    %15 = arith.addf %11, %14 : vector<8x128xf32>
    %cst_13 = arith.constant 0.000000e+00 : f32
    %16 = vector.broadcast %cst_13 : f32 to vector<8x128xf32>
    %17 = arith.maximumf %15, %16 : vector<8x128xf32>
    %c0_14 = arith.constant 0 : index
    %c0_15 = arith.constant 0 : index
    %c0_16 = arith.constant 0 : index
    %18 = vector.load %arg11[%c0_14, %c0_15, %c0_16] : memref<2x8x128xf32, #tpu.memory_space<vmem>>, vector<1x8x128xf32>
    %19 = vector.shape_cast %18 : vector<1x8x128xf32> to vector<8x128xf32>
    %20 = vector.shape_cast %17 : vector<8x128xf32> to vector<1x8x128xf32>
    tpu.vector_store %arg11[%c0_14, %c0_15, %c0_16], %20 {strides = array<i32>} : memref<2x8x128xf32, #tpu.memory_space<vmem>>, vector<1x8x128xf32>,
    %21 = arith.truncf %17 : vector<8x128xf32> to vector<8x128xbf16>
    %c1 = arith.constant 1 : index
    %c0_17 = arith.constant 0 : index
    %c0_18 = arith.constant 0 : index
    %22 = vector.load %arg4[%c1, %c0_17, %c0_18] : memref<2x128x128xbf16, #tpu.memory_space<vmem>>, vector<1x128x128xbf16>
    %23 = vector.shape_cast %22 : vector<1x128x128xbf16> to vector<128x128xbf16>
    %cst_19 = arith.constant dense<0.000000e+00> : vector<8x128xf32>
    %24 = tpu.matmul %21, %23, %cst_19 {dimension_numbers = #tpu.dot_dimension_numbers<[1], [0], [0], [1], [0, 0, 1, 1], [], []>} : vector<8x128xbf16>, vector<128x128xbf16>, vector<8x128xf32> -> vector<8x128xf32>
    %c1_20 = arith.constant 1 : index
    %c0_21 = arith.constant 0 : index
    %c0_22 = arith.constant 0 : index
    %25 = vector.load %arg5[%c1_20, %c0_21, %c0_22] : memref<2x1x128xf32, #tpu.memory_space<vmem>>, vector<1x1x128xf32>
    %26 = vector.shape_cast %25 : vector<1x1x128xf32> to vector<1x128xf32>
    %27 = vector.broadcast %26 : vector<1x128xf32> to vector<8x128xf32>
    %28 = arith.addf %24, %27 : vector<8x128xf32>
    %cst_23 = arith.constant 0.000000e+00 : f32
    %29 = vector.broadcast %cst_23 : f32 to vector<8x128xf32>
    %30 = arith.maximumf %28, %29 : vector<8x128xf32>
    %c1_24 = arith.constant 1 : index
    %c0_25 = arith.constant 0 : index
    %c0_26 = arith.constant 0 : index
    %31 = vector.load %arg11[%c1_24, %c0_25, %c0_26] : memref<2x8x128xf32, #tpu.memory_space<vmem>>, vector<1x8x128xf32>
    %32 = vector.shape_cast %31 : vector<1x8x128xf32> to vector<8x128xf32>
    %33 = vector.shape_cast %30 : vector<8x128xf32> to vector<1x8x128xf32>
    tpu.vector_store %arg11[%c1_24, %c0_25, %c0_26], %33 {strides = array<i32>} : memref<2x8x128xf32, #tpu.memory_space<vmem>>, vector<1x8x128xf32>,
    %34 = arith.truncf %30 : vector<8x128xf32> to vector<8x128xbf16>
    %c0_27 = arith.constant 0 : index
    %c0_28 = arith.constant 0 : index
    %35 = vector.load %arg6[%c0_27, %c0_28] : memref<128x128xbf16, #tpu.memory_space<vmem>>, vector<128x128xbf16>
    %cst_29 = arith.constant dense<0.000000e+00> : vector<8x128xf32>
    %36 = tpu.matmul %34, %35, %cst_29 {dimension_numbers = #tpu.dot_dimension_numbers<[1], [0], [0], [1], [0, 0, 1, 1], [], []>} : vector<8x128xbf16>, vector<128x128xbf16>, vector<8x128xf32> -> vector<8x128xf32>
    %c0_30 = arith.constant 0 : index
    %c0_31 = arith.constant 0 : index
    %37 = vector.load %arg7[%c0_30, %c0_31] : memref<1x128xf32, #tpu.memory_space<vmem>>, vector<1x128xf32>
    %38 = vector.broadcast %37 : vector<1x128xf32> to vector<8x128xf32>
    %39 = arith.addf %36, %38 : vector<8x128xf32>
    %cst_32 = arith.constant 0.000000e+00 : f32
    %40 = vector.broadcast %cst_32 : f32 to vector<8x128xf32>
    %41 = arith.maximumf %39, %40 : vector<8x128xf32>
    %42 = arith.truncf %41 : vector<8x128xf32> to vector<8x128xbf16>
    %c0_33 = arith.constant 0 : index
    %c0_34 = arith.constant 0 : index
    %43 = vector.load %arg8[%c0_33, %c0_34] : memref<128x128xbf16, #tpu.memory_space<vmem>>, vector<128x128xbf16>
    %cst_35 = arith.constant dense<0.000000e+00> : vector<8x128xf32>
    %44 = tpu.matmul %42, %43, %cst_35 {dimension_numbers = #tpu.dot_dimension_numbers<[1], [0], [0], [1], [0, 0, 1, 1], [], []>} : vector<8x128xbf16>, vector<128x128xbf16>, vector<8x128xf32> -> vector<8x128xf32>
    %c0_36 = arith.constant 0 : index
    %c0_37 = arith.constant 0 : index
    %45 = vector.load %arg9[%c0_36, %c0_37] : memref<1x128xf32, #tpu.memory_space<vmem>>, vector<1x128xf32>
    %46 = vector.broadcast %45 : vector<1x128xf32> to vector<8x128xf32>
    %47 = arith.addf %44, %46 : vector<8x128xf32>
    %48 = arith.truncf %47 : vector<8x128xf32> to vector<8x128xbf16>
    %c0_38 = arith.constant 0 : index
    %c0_39 = arith.constant 0 : index
    %49 = vector.load %arg10[%c0_38, %c0_39] : memref<8x128xbf16, #tpu.memory_space<vmem>>, vector<8x128xbf16>
    tpu.vector_store %arg10[%c0_38, %c0_39], %48 {strides = array<i32>} : memref<8x128xbf16, #tpu.memory_space<vmem>>, vector<8x128xbf16>,
    return
  }
  func.func @transform_0(%arg0: i32) -> (i32, i32) {
    %c0_i32 = arith.constant 0 : i32
    %c0_i32_0 = arith.constant 0 : i32
    return %arg0, %c0_i32 : i32, i32
  }
  func.func @transform_1(%arg0: i32) -> (i32, i32) {
    %c0_i32 = arith.constant 0 : i32
    %c0_i32_0 = arith.constant 0 : i32
    %c0_i32_1 = arith.constant 0 : i32
    return %c0_i32, %c0_i32_0 : i32, i32
  }
  func.func @transform_2(%arg0: i32) -> (i32, i32) {
    %c0_i32 = arith.constant 0 : i32
    %c0_i32_0 = arith.constant 0 : i32
    %c0_i32_1 = arith.constant 0 : i32
    return %c0_i32, %c0_i32_0 : i32, i32
  }
  func.func @transform_3(%arg0: i32) -> (i32, i32, i32) {
    %c0_i32 = arith.constant 0 : i32
    %c0_i32_0 = arith.constant 0 : i32
    %c0_i32_1 = arith.constant 0 : i32
    %c0_i32_2 = arith.constant 0 : i32
    return %c0_i32, %c0_i32_0, %c0_i32_1 : i32, i32, i32
  }
  func.func @transform_4(%arg0: i32) -> (i32, i32, i32) {
    %c0_i32 = arith.constant 0 : i32
    %c0_i32_0 = arith.constant 0 : i32
    %c0_i32_1 = arith.constant 0 : i32
    %c0_i32_2 = arith.constant 0 : i32
    return %c0_i32, %c0_i32_0, %c0_i32_1 : i32, i32, i32
  }
  func.func @transform_5(%arg0: i32) -> (i32, i32) {
    %c0_i32 = arith.constant 0 : i32
    %c0_i32_0 = arith.constant 0 : i32
    %c0_i32_1 = arith.constant 0 : i32
    return %c0_i32, %c0_i32_0 : i32, i32
  }
  func.func @transform_6(%arg0: i32) -> (i32, i32) {
    %c0_i32 = arith.constant 0 : i32
    %c0_i32_0 = arith.constant 0 : i32
    %c0_i32_1 = arith.constant 0 : i32
    return %c0_i32, %c0_i32_0 : i32, i32
  }
  func.func @transform_7(%arg0: i32) -> (i32, i32) {
    %c0_i32 = arith.constant 0 : i32
    %c0_i32_0 = arith.constant 0 : i32
    %c0_i32_1 = arith.constant 0 : i32
    return %c0_i32, %c0_i32_0 : i32, i32
  }
  func.func @transform_8(%arg0: i32) -> (i32, i32) {
    %c0_i32 = arith.constant 0 : i32
    %c0_i32_0 = arith.constant 0 : i32
    %c0_i32_1 = arith.constant 0 : i32
    return %c0_i32, %c0_i32_0 : i32, i32
  }
  func.func @transform_9(%arg0: i32) -> (i32, i32) {
    %c0_i32 = arith.constant 0 : i32
    %c0_i32_0 = arith.constant 0 : i32
    return %arg0, %c0_i32 : i32, i32
  }
  func.func @transform_10(%arg0: i32) -> (i32, i32, i32) {
    %c0_i32 = arith.constant 0 : i32
    %c0_i32_0 = arith.constant 0 : i32
    %c0_i32_1 = arith.constant 0 : i32
    return %c0_i32, %arg0, %c0_i32_0 : i32, i32, i32
  }
}

</mosaic_0001>

<bundles_post_ra>
// kernel: fnn_forward.1
= control target key start
LH: loop header
LB: loop body
LE: loop exit
PB: predicated region body
PF: predicated region fallthrough
CT: control target
= control target key end

     0   :  { %16 = vsyncpa [#allocation3], 0  ;;  %s1717_s0 = inlined_call_operand.vmem [shape: bf16[8,784], index: 0, kind: input, shape index: {}]   ;;  %s1718_s1 = inlined_call_operand.vmem [shape: bf16[784,128], index: 1, kind: input, shape index: {}]   ;;  %s1719_s2 = inlined_call_operand.vmem [shape: f32[1,128], index: 2, kind: input, shape index: {}]   ;;  %s1720_s3 = inlined_call_operand.hbm [shape: bf16[2,128,128], index: 3, kind: input, shape index: {}]   ;;  %s1721_s4 = inlined_call_operand.vmem [shape: f32[2,1,128], index: 4, kind: input, shape index: {}]   ;;  %s1722_s5 = inlined_call_operand.vmem [shape: bf16[128,128], index: 5, kind: input, shape index: {}]   ;;  %s1723_s6 = inlined_call_operand.vmem [shape: f32[1,128], index: 6, kind: input, shape index: {}]   ;;  %s1724_s7 = inlined_call_operand.hbm [shape: bf16[128,128], index: 7, kind: input, shape index: {}]   ;;  %s1725_s8 = inlined_call_operand.vmem [shape: f32[1,128], index: 8, kind: input, shape index: {}]   ;;  %s1726_s9 = inlined_call_operand.hbm [shape: bf16[8,128], index: 9, kind: output, shape index: {0}]   ;;  %s1727_s10 = inlined_call_operand.vmem [shape: f32[2,8,128], index: 10, kind: output, shape index: {1}]  }
   0x1   :  { %17 = vsyncpa [#allocation6], 0 }
   0x2   :  { %18 = vsyncpa [#allocation4], 0  ;;  %s29_s15 = sshll.u32 %s1720_s3, 4  ;;  %s1444_s16 = smov [#allocation2]   ;;  %s30_s15 = int_to_ptr.hbm [resolvable:$true] %s29_s15 }
   0x3   :  { %s31_s17 = sshll.u32 %s1444_s16, 4  ;;  %s48_s20 = sshll.u32 %s1724_s7, 4  ;;  %s32_s17 = int_to_ptr.vmem [resolvable:$true] %s31_s17  ;;  %s49_s20 = int_to_ptr.hbm [resolvable:$true] %s48_s20 }
   0x4   :  { %s1445_s21 = smov 64   ;;  %s1446_s22 = smov 4  }
   0x5   :  { %37 = dma.hbm_to_vmem [thread:$0]  %s30_s15, 2048, %s32_s17, [#allocation3], %s1445_s21, %s1445_s21, %s1446_s22  }
   0x6   :  { %s1447_s23 = smov [#allocation5]  }
   0x7   :  { %s50_s24 = sshll.u32 %s1447_s23, 4  ;;  %s51_s24 = int_to_ptr.vmem [resolvable:$true] %s50_s24 }
   0x8   :  { %56 = dma.hbm_to_vmem [thread:$0]  %s49_s20, 1024, %s51_s24, [#allocation6], %s1445_s21, %s1445_s21, %s1446_s22  }
   0x9   :  { %1438 = dma.done.wait [#allocation3], 2048  }
   0xa   :  { %1439 = vsyncadd [#allocation3], 4294965248 }
   0xb   :  { %1440 = dma.done.wait [#allocation6], 1024  }
   0xc   :  { %1441 = vsyncadd [#allocation6], 4294966272  ;;  %v1282_v0 = vld [vmem:[%s1718_s1 + $0x38] sm:$0xff]  ;;  %v1281_v3 = vld [vmem:[%s1718_s1 + $0x30] sm:$0xff]  ;;  %vm492_vm0 = vcmask 130048   ;;  %s933_s24 = sshll.u32 %s1726_s9, 4  ;;  %s934_s24 = int_to_ptr.hbm [resolvable:$true] %s933_s24 }
   0xd   :  { %v1290_v1 = vld [vmem:[%s1718_s1 + $0x78] sm:$0xff]  ;;  %496 = vmatpush.bf16.msra.mxu0 %v1282_v0  ;;  %v1289_v4 = vld [vmem:[%s1718_s1 + $0x70] sm:$0xff]  ;;  %v1280_v8 = vld [vmem:[%s1718_s1 + $0x28] sm:$0xff] }
   0xe   :  { %v1298_v2 = vld [vmem:[%s1718_s1 + $0xb8] sm:$0xff]  ;;  %509 = vmatpush.bf16.msra.mxu1 %v1290_v1  ;;  %v1297_v5 = vld [vmem:[%s1718_s1 + $0xb0] sm:$0xff]  ;;  %v1288_v9 = vld [vmem:[%s1718_s1 + $0x68] sm:$0xff] }
   0xf   :  { %522 = vmatpush.bf16.msra.mxu2 %v1298_v2  ;;  %v1306_v6 = vld [vmem:[%s1718_s1 + $0xf8] sm:$0xff]  ;;  %v1305_v7 = vld [vmem:[%s1718_s1 + $0xf0] sm:$0xff]  ;;  %v1296_v10 = vld [vmem:[%s1718_s1 + $0xa8] sm:$0xff] }
  0x10   :  { %535 = vmatpush.bf16.msra.mxu3 %v1306_v6  ;;  %v1304_v11 = vld [vmem:[%s1718_s1 + $0xe8] sm:$0xff]  ;;  %v1279_v12 = vld [vmem:[%s1718_s1 + $0x20] sm:$0xff]  ;;  %v1278_v16 = vld [vmem:[%s1718_s1 + $0x18] sm:$0xff] }
  0x11   :  { %497 = vmatpush.bf16.msra.mxu0 %v1281_v3  ;;  %v1287_v13 = vld [vmem:[%s1718_s1 + $0x60] sm:$0xff]  ;;  %v1286_v17 = vld [vmem:[%s1718_s1 + $0x58] sm:$0xff]  ;;  %v1277_v20 = vld [vmem:[%s1718_s1 + $0x10] sm:$0xff] }
  0x12   :  { %510 = vmatpush.bf16.msra.mxu1 %v1289_v4  ;;  %v1295_v14 = vld [vmem:[%s1718_s1 + $0xa0] sm:$0xff]  ;;  %v1294_v18 = vld [vmem:[%s1718_s1 + $0x98] sm:$0xff]  ;;  %v1285_v21 = vld [vmem:[%s1718_s1 + $0x50] sm:$0xff] }
  0x13   :  { %523 = vmatpush.bf16.msra.mxu2 %v1297_v5  ;;  %v1303_v15 = vld [vmem:[%s1718_s1 + $0xe0] sm:$0xff]  ;;  %v1302_v19 = vld [vmem:[%s1718_s1 + $0xd8] sm:$0xff]  ;;  %v1293_v22 = vld [vmem:[%s1718_s1 + $0x90] sm:$0xff] }
  0x14   :  { %536 = vmatpush.bf16.msra.mxu3 %v1305_v7  ;;  %v1301_v23 = vld [vmem:[%s1718_s1 + $0xd0] sm:$0xff]  ;;  %v1276_v24 = vld [vmem:[%s1718_s1 + $0x8] sm:$0xff]  ;;  %v68_v26 = vld [vmem:[%s1717_s0] sm:$0xff] }
  0x15   :  { %498 = vmatpush.bf16.msra.mxu0 %v1280_v8  ;;  %v1284_v25 = vld [vmem:[%s1718_s1 + $0x48] sm:$0xff]  ;;  %v178_v29 = vunpack.c.l.b16 %v68_v26  ;;  %v179_v31 = vunpack.c.h.b16 %v68_v26  ;;  %v1275_v32 = vld [vmem:[%s1718_s1] sm:$0xff]  ;;  %v1314_v34 = vld [vmem:[%s1718_s1 + $0x138] sm:$0xff] }
  0x16   :  { %511 = vmatpush.bf16.msra.mxu1 %v1288_v9  ;;  %v1292_v27 = vld [vmem:[%s1718_s1 + $0x88] sm:$0xff]  ;;  %v1283_v33 = vld [vmem:[%s1718_s1 + $0x40] sm:$0xff]  ;;  %v1322_v35 = vld [vmem:[%s1718_s1 + $0x178] sm:$0xff] }
  0x17   :  { %524 = vmatpush.bf16.msra.mxu2 %v1296_v10  ;;  %v69_v28 = vld [vmem:[%s1717_s0 + $0x8] sm:$0xff]  ;;  %v1291_v36 = vld [vmem:[%s1718_s1 + $0x80] sm:$0xff]  ;;  %v185_v38 = vpack.c.b16 %v178_v29, %v178_v29  ;;  %v186_v39 = vpack.c.b16 %v179_v31, %v179_v31  ;;  %v1313_v43 = vld [vmem:[%s1718_s1 + $0x130] sm:$0xff] }
  0x18   :  { %537 = vmatpush.bf16.msra.mxu3 %v1304_v11  ;;  %v1300_v30 = vld [vmem:[%s1718_s1 + $0xc8] sm:$0xff]  ;;  %v180_v37 = vunpack.c.l.b16 %v69_v28  ;;  %v181_v40 = vunpack.c.h.b16 %v69_v28  ;;  %v1299_v41 = vld [vmem:[%s1718_s1 + $0xc0] sm:$0xff]  ;;  %v1321_v44 = vld [vmem:[%s1718_s1 + $0x170] sm:$0xff] }
  0x19   :  { %499 = vmatpush.bf16.msra.mxu0 %v1279_v12  ;;  %v1323_v42 = vld [vmem:[%s1718_s1 + $0x180] sm:$0xff]  ;;  %v1312_v47 = vld [vmem:[%s1718_s1 + $0x128] sm:$0xff]  ;;  %v71_v51 = vld [vmem:[%s1717_s0 + $0x18] sm:$0xf] }
  0x1a   :  { %512 = vmatpush.bf16.msra.mxu1 %v1287_v13  ;;  %v187_v45 = vpack.c.b16 %v180_v37, %v180_v37  ;;  %v188_v46 = vpack.c.b16 %v181_v40, %v181_v40  ;;  %v1320_v48 = vld [vmem:[%s1718_s1 + $0x168] sm:$0xff]  ;;  %v1311_v49 = vld [vmem:[%s1718_s1 + $0x120] sm:$0xff]  ;;  %v1310_v52 = vld [vmem:[%s1718_s1 + $0x118] sm:$0xff]  ;;  %v184_v54 = vunpack.c.l.b16 %v71_v51 }
  0x1b   :  { %525 = vmatpush.bf16.msra.mxu2 %v1295_v14  ;;  %v1319_v50 = vld [vmem:[%s1718_s1 + $0x160] sm:$0xff]  ;;  %v1318_v53 = vld [vmem:[%s1718_s1 + $0x158] sm:$0xff]  ;;  %v1309_v55 = vld [vmem:[%s1718_s1 + $0x110] sm:$0xff] }
  0x1c   :  { %538 = vmatpush.bf16.msra.mxu3 %v1303_v15  ;;  %v1317_v56 = vld [vmem:[%s1718_s1 + $0x150] sm:$0xff]  ;;  %v191_v57 = vpack.c.b16 %v184_v54, %v184_v54  ;;  %v1308_v58 = vld [vmem:[%s1718_s1 + $0x108] sm:$0xff]  ;;  %v1307_v63 = vld [vmem:[%s1718_s1 + $0x100] sm:$0xff] }
  0x1d   :  { %500 = vmatpush.bf16.msra.mxu0 %v1278_v16  ;;  %v1316_v59 = vld [vmem:[%s1718_s1 + $0x148] sm:$0xff]  ;;  %v70_v60 = vld [vmem:[%s1717_s0 + $0x10] sm:$0xff]  ;;  %v1315_v0 = vld [vmem:[%s1718_s1 + $0x140] sm:$0xff] }
  0x1e   :  { %513 = vmatpush.bf16.msra.mxu1 %v1286_v17  ;;  %v182_v61 = vunpack.c.l.b16 %v70_v60  ;;  %v183_v62 = vunpack.c.h.b16 %v70_v60  ;;  %v1331_v3 = vld [vmem:[#allocation2 + $0x38] sm:$0xff]  ;;  %v1330_v4 = vld [vmem:[#allocation2 + $0x30] sm:$0xff]  ;;  %v1329_v5 = vld [vmem:[#allocation2 + $0x28] sm:$0xff] }
  0x1f   :  { %526 = vmatpush.bf16.msra.mxu2 %v1294_v18  ;;  %v1328_v6 = vld [vmem:[#allocation2 + $0x20] sm:$0xff]  ;;  %v1327_v7 = vld [vmem:[#allocation2 + $0x18] sm:$0xff]  ;;  %v1326_v8 = vld [vmem:[#allocation2 + $0x10] sm:$0xff] }
  0x20   :  { %539 = vmatpush.bf16.msra.mxu3 %v1302_v19  ;;  %v189_v1 = vpack.c.b16 %v182_v61, %v182_v61  ;;  %v190_v2 = vpack.c.b16 %v183_v62, %v183_v62  ;;  %v1325_v9 = vld [vmem:[#allocation2 + $0x8] sm:$0xff]  ;;  %v1324_v12 = vld [vmem:[#allocation2] sm:$0xff]  ;;  %v1339_v15 = vld [vmem:[#allocation2 + $0x78] sm:$0xff] }
  0x21   :  { %501 = vmatpush.bf16.msra.mxu0 %v1277_v20  ;;  %v1338_v18 = vld [vmem:[#allocation2 + $0x70] sm:$0xff]  ;;  %v1361_v19 = vld [vmem:[%s1719_s2] ss:$0 sm:$0xff]  ;;  %v1337_v20 = vld [vmem:[#allocation2 + $0x68] sm:$0xff] }
  0x22   :  { %514 = vmatpush.bf16.msra.mxu1 %v1285_v21  ;;  %v1335_v26 = vld [vmem:[#allocation2 + $0x58] sm:$0xff]  ;;  %v1334_v29 = vld [vmem:[#allocation2 + $0x50] sm:$0xff]  ;;  %v1352_v60 = vld [vmem:[#allocation5 + $0x20] sm:$0xff] }
  0x23   :  { %527 = vmatpush.bf16.msra.mxu2 %v1293_v22  ;;  %v1351_v61 = vld [vmem:[#allocation5 + $0x18] sm:$0xff]  ;;  %v1350_v62 = vld [vmem:[#allocation5 + $0x10] sm:$0xff] }
  0x24   :  { %540 = vmatpush.bf16.msra.mxu3 %v1301_v23 }
  0x25   :  { %502 = vmatpush.bf16.msra.mxu0 %v1276_v24  ;;  %v1336_v24 = vld [vmem:[#allocation2 + $0x60] sm:$0xff] }
  0x26   :  { %515 = vmatpush.bf16.msra.mxu1 %v1284_v25 }
  0x27   :  { %528 = vmatpush.bf16.msra.mxu2 %v1292_v27 }
  0x28   :  { %541 = vmatpush.bf16.msra.mxu3 %v1300_v30 }
  0x29   :  { %503 = vmatpush.bf16.msra.mxu0 %v1275_v32 }
  0x2a   :  { %516 = vmatpush.bf16.msra.mxu1 %v1283_v33 }
  0x2b   :  { %529 = vmatpush.bf16.msra.mxu2 %v1291_v36 }
  0x2c   :  { %504 = vmatmul.bf16.vlgmr.msra.gmra.mxu0 %v185_v38  ;;  %542 = vmatpush.bf16.msra.mxu3 %v1299_v41  ;;  %v1333_v41 = vld [vmem:[#allocation2 + $0x48] sm:$0xff] }
  0x2d   :  { %548 = vmatpush.bf16.msrb.mxu0 %v1314_v34  ;;  %517 = vmatmul.bf16.vlgmr.msra.gmra.mxu1 %v186_v39 }
  0x2e   :  { %561 = vmatpush.bf16.msrb.mxu1 %v1322_v35  ;;  %530 = vmatmul.bf16.vlgmr.msra.gmra.mxu2 %v187_v45  ;;  %v1345_v45 = vld [vmem:[%s1722_s5 + $0x28] sm:$0xff] }
  0x2f   :  { %581 = vmatpush.bf16.msrb.mxu2 %v1323_v42  ;;  %543 = vmatmul.bf16.vlgmr.msra.gmra.mxu3 %v188_v46  ;;  %v1332_v42 = vld [vmem:[#allocation2 + $0x40] sm:$0xff] }
  0x30   :  { %657 = vmatpush.bf16.msrb.mxu3 %v1331_v3  ;;  %v1344_v46 = vld [vmem:[%s1722_s5 + $0x20] sm:$0xff] }
  0x31   :  { %549 = vmatpush.bf16.msrb.mxu0 %v1313_v43  ;;  %v1347_v43 = vld [vmem:[%s1722_s5 + $0x38] sm:$0xff] }
  0x32   :  { %562 = vmatpush.bf16.msrb.mxu1 %v1321_v44  ;;  %v1346_v44 = vld [vmem:[%s1722_s5 + $0x30] sm:$0xff] }
  0x33   :  { %743 = vmatpush.bf16.msra.mxu2 %v1339_v15 }
  0x34   :  { %658 = vmatpush.bf16.msrb.mxu3 %v1330_v4 }
  0x35   :  { %550 = vmatpush.bf16.msrb.mxu0 %v1312_v47  ;;  %v1343_v47 = vld [vmem:[%s1722_s5 + $0x18] sm:$0xff] }
  0x36   :  { %563 = vmatpush.bf16.msrb.mxu1 %v1320_v48  ;;  %v1342_v48 = vld [vmem:[%s1722_s5 + $0x10] sm:$0xff] }
  0x37   :  { %744 = vmatpush.bf16.msra.mxu2 %v1338_v18 }
  0x38   :  { %659 = vmatpush.bf16.msrb.mxu3 %v1329_v5  ;;  %v1349_v5 = vld [vmem:[#allocation5 + $0x8] sm:$0xff] }
  0x39   :  { %551 = vmatpush.bf16.msrb.mxu0 %v1311_v49  ;;  %v1362_v49 = vld [vmem:[%s1721_s4] ss:$0 sm:$0xff] }
  0x3a   :  { %564 = vmatpush.bf16.msrb.mxu1 %v1319_v50 }
  0x3b   :  { %745 = vmatpush.bf16.msra.mxu2 %v1337_v20 }
  0x3c   :  { %660 = vmatpush.bf16.msrb.mxu3 %v1328_v6  ;;  %v1348_v6 = vld [vmem:[#allocation5] sm:$0xff] }
  0x3d   :  { %552 = vmatpush.bf16.msrb.mxu0 %v1310_v52 }
  0x3e   :  { %565 = vmatpush.bf16.msrb.mxu1 %v1318_v53  ;;  %1144 = vmatmul.msk.bf16.vlgmr.msrb.gmra.mxu2 %vm492_vm0, %v191_v57  ;;  %v1355_v57 = vld [vmem:[#allocation5 + $0x38] sm:$0xff] }
  0x3f   :  { %746 = vmatpush.bf16.msra.mxu2 %v1336_v24 }
  0x40   :  { %661 = vmatpush.bf16.msrb.mxu3 %v1327_v7  ;;  %v1364_v7 = vld [vmem:[%s1723_s6] ss:$0 sm:$0xff] }
  0x41   :  { %553 = vmatpush.bf16.msrb.mxu0 %v1309_v55  ;;  %v1341_v55 = vld [vmem:[%s1722_s5 + $0x8] sm:$0xff] }
  0x42   :  { %566 = vmatpush.bf16.msrb.mxu1 %v1317_v56  ;;  %v1340_v56 = vld [vmem:[%s1722_s5] sm:$0xff] }
  0x43   :  { %747 = vmatpush.bf16.msra.mxu2 %v1335_v26 }
  0x44   :  { %662 = vmatpush.bf16.msrb.mxu3 %v1326_v8 }
  0x45   :  { %554 = vmatpush.bf16.msrb.mxu0 %v1308_v58  ;;  %v1354_v58 = vld [vmem:[#allocation5 + $0x30] sm:$0xff] }
  0x46   :  { %567 = vmatpush.bf16.msrb.mxu1 %v1316_v59  ;;  %v1353_v59 = vld [vmem:[#allocation5 + $0x28] sm:$0xff] }
  0x47   :  { %748 = vmatpush.bf16.msra.mxu2 %v1334_v29 }
  0x48   :  { %663 = vmatpush.bf16.msrb.mxu3 %v1325_v9 }
  0x49   :  { %555 = vmatpush.bf16.msrb.mxu0 %v1307_v63  ;;  %v1363_v63 = vld [vmem:[%s1721_s4 + $0x1] ss:$0 sm:$0xff] }
  0x4a   :  { %568 = vmatpush.bf16.msrb.mxu1 %v1315_v0 }
  0x4b   :  { %749 = vmatpush.bf16.msra.mxu2 %v1333_v41 }
  0x4c   :  { %556 = vmatmul.bf16.vlgmr.msrb.gmra.mxu0 %v189_v1  ;;  %664 = vmatpush.bf16.msrb.mxu3 %v1324_v12 }
  0x4d   :  { %569 = vmatmul.bf16.vlgmr.msrb.gmra.mxu1 %v190_v2  ;;  %828 = vmatpush.bf16.msra.mxu0 %v1347_v43 }
  0x4e   :  { %911 = vmatpush.bf16.msra.mxu1 %v1355_v57 }
  0x4f   :  { %750 = vmatpush.bf16.msra.mxu2 %v1332_v42 }
  0x51   :  { %829 = vmatpush.bf16.msra.mxu0 %v1346_v44 }
  0x52   :  { %912 = vmatpush.bf16.msra.mxu1 %v1354_v58 }
  0x55   :  { %830 = vmatpush.bf16.msra.mxu0 %v1345_v45 }
  0x56   :  { %913 = vmatpush.bf16.msra.mxu1 %v1353_v59 }
  0x59   :  { %831 = vmatpush.bf16.msra.mxu0 %v1344_v46 }
  0x5a   :  { %914 = vmatpush.bf16.msra.mxu1 %v1352_v60 }
  0x5d   :  { %832 = vmatpush.bf16.msra.mxu0 %v1343_v47 }
  0x5e   :  { %915 = vmatpush.bf16.msra.mxu1 %v1351_v61 }
  0x61   :  { %833 = vmatpush.bf16.msra.mxu0 %v1342_v48 }
  0x62   :  { %916 = vmatpush.bf16.msra.mxu1 %v1350_v62 }
  0x65   :  { %834 = vmatpush.bf16.msra.mxu0 %v1341_v55 }
  0x66   :  { %917 = vmatpush.bf16.msra.mxu1 %v1349_v5 }
  0x69   :  { %835 = vmatpush.bf16.msra.mxu0 %v1340_v56 }
  0x6a   :  { %918 = vmatpush.bf16.msra.mxu1 %v1348_v6 }
  0xa9   :  { %v505_v10 = vpop.f32.mrf.mxu0 }
  0xaa   :  { %v518_v11 = vpop.f32.mrf.mxu1  ;;  %v506_v21 = vadd.f32 %v1361_v19, %v505_v10 }
  0xac   :  { %v519_v25 = vadd.f32 %v518_v11, %v506_v21 }
  0xb1   :  { %v507_v13 = vpop.f32.mrf.mxu0  ;;  %v531_v16 = vpop.f32.mrf.mxu2 }
  0xb2   :  { %v520_v14 = vpop.f32.mrf.mxu1  ;;  %v544_v17 = vpop.f32.mrf.mxu3  ;;  %v532_v27 = vadd.f32 %v531_v16, %v519_v25  ;;  %v1365_v13 = vld [vmem:[%s1725_s8] ss:$0 sm:$0xff] }
  0xb4   :  { %v545_v30 = vadd.f32 %v544_v17, %v532_v27 }
  0xb9   :  { %v533_v22 = vpop.f32.mrf.mxu2 }
  0xba   :  { %v546_v23 = vpop.f32.mrf.mxu3 }
  0xc1   :  { %v583_v28 = vpop.f32.mrf.mxu2 }
  0xc9   :  { %v557_v31 = vpop.f32.mrf.mxu0  ;;  %v585_v35 = vpop.f32.mrf.mxu2 }
  0xca   :  { %v570_v32 = vpop.f32.mrf.mxu1  ;;  %v558_v33 = vadd.f32 %v557_v31, %v545_v30 }
  0xcc   :  { %v571_v34 = vadd.f32 %v570_v32, %v558_v33 }
  0xce   :  { %v584_v36 = vadd.f32 %v583_v28, %v571_v34 }
  0xd0   :  { %v587_v37 = vmax.f32 %v584_v36, 0.0 }
  0xd1   :  { %v559_v38 = vpop.f32.mrf.mxu0 }
  0xd2   :  { %v572_v39 = vpop.f32.mrf.mxu1  ;;  %v588_v40 = vpack.c.bf16 %v587_v37, %v587_v37 }
  0xd4   :  { %665 = vmatmul.bf16.vlgmr.msrb.gmra.mxu3 %v588_v40 }
 0x157   :  { %v666_v50 = vpop.f32.mrf.mxu3 }
 0x158   :  { %v667_v51 = vadd.f32 %v1362_v49, %v666_v50 }
 0x15a   :  { %v670_v52 = vmax.f32 %v667_v51, 0.0 }
 0x15c   :  { %671 = vst [vmem:[%s1727_s10] sm:$0xff] %v670_v52  ;;  %v672_v53 = vpack.c.bf16 %v670_v52, %v670_v52 }
 0x15e   :  { %751 = vmatmul.bf16.vlgmr.msra.gmra.mxu2 %v672_v53 }
 0x15f   :  { %v668_v54 = vpop.f32.mrf.mxu3 }
 0x1e1   :  { %v752_v0 = vpop.f32.mrf.mxu2 }
 0x1e2   :  { %v753_v1 = vadd.f32 %v1363_v63, %v752_v0 }
 0x1e4   :  { %v756_v2 = vmax.f32 %v753_v1, 0.0 }
 0x1e6   :  { %1210 = vst [vmem:[%s1727_s10 + $0x8] sm:$0xff] %v756_v2  ;;  %v759_v3 = vpack.c.bf16 %v756_v2, %v756_v2  ;;  %s1448_s10 = smov [#allocation7]  }
 0x1e7   :  { %s931_s21 = sshll.u32 %s1448_s10, 4  ;;  %s932_s21 = int_to_ptr.vmem [resolvable:$true] %s931_s21 }
 0x1e8   :  { %836 = vmatmul.bf16.vlgmr.msra.gmra.mxu0 %v759_v3 }
 0x1e9   :  { %v754_v4 = vpop.f32.mrf.mxu2 }
 0x265   :  { %v837_v8 = vpop.f32.mrf.mxu0 }
 0x266   :  { %v838_v9 = vadd.f32 %v1364_v7, %v837_v8 }
 0x268   :  { %v841_v10 = vmax.f32 %v838_v9, 0.0 }
 0x26a   :  { %v842_v11 = vpack.c.bf16 %v841_v10, %v841_v10 }
 0x26c   :  { %919 = vmatmul.bf16.vlgmr.msra.gmra.mxu1 %v842_v11 }
 0x26d   :  { %v839_v12 = vpop.f32.mrf.mxu0 }
 0x2e9   :  { %v920_v14 = vpop.f32.mrf.mxu1 }
 0x2ea   :  { %v921_v15 = vadd.f32 %v1365_v13, %v920_v14 }
 0x2ec   :  { %v924_v16 = vpack.c.bf16 %v921_v15, %v921_v15 }
 0x2ee   :  { %925 = vst [vmem:[#allocation7] sm:$0xf] %v924_v16 }
 0x2ef   :  { %936 = dma.vmem_to_hbm [thread:$0]  %s932_s21, 64, %s934_s24, [#allocation4]  }
 0x2f1   :  { %v922_v17 = vpop.f32.mrf.mxu1 }
 0x2f2   :  { %1442 = dma.done.wait [#allocation4], 64  }
 0x2f3   :  { %1443 = vsyncadd [#allocation4], 4294967232 }
 0x2f4   :  { %945 = vsyncpa [#allocation3], 1 }
 0x2f5   :  { %946 = vsyncpa [#allocation6], 1 }
 0x2f6   :  { %947 = vsyncpa [#allocation4], 1 }

</bundles_post_ra>
